<compile_context>
chip_gen: v7x
topology: tpu7x:2x2x1
jax: 0.10.0
libtpu: 0.0.40
codegen_flags: <defaults>
</compile_context>

<pallas_src>
import math
import jax
import jax.numpy as jnp
from jax import lax
from jax.experimental import pallas as pl
from jax.experimental.pallas import tpu as pltpu


def _round_up(x, m):
    return ((x + m - 1) // m) * m


def _tpu_vmem_bytes():
    """(physical VMEM per TensorCore, multi-TC chip?) — conservative fallback."""
    try:
        kind = jax.devices()[0].device_kind.lower()
    except Exception:
        kind = ""
    if "v5" in kind or "v6" in kind:
        return 128 * 1024 * 1024, False          # v5e/v5p/v6e: 128 MiB VMEM, 1 TC
    return 64 * 1024 * 1024, True                # v7x (and unknown): 64 MiB/TC, 2 TCs


def _final_attention_kernel(
    x_ref,        # (TB, T, D)    VMEM, native dtype (f32 or bf16)
    xlast_ref,    # (TB, D)       VMEM, x[:, -1, :]
    wq_ref,       # (D, Hp)       VMEM, x.dtype
    wkv_ref,      # (D, 2Hp)      VMEM, x.dtype, fused [W_k | W_v]
    bq_ref,       # (1, Hp)       VMEM, f32
    bkv_ref,      # (1, 2Hp)      VMEM, f32 (b_in folded into the k half)
    wout_ref,     # (1, Hp)       VMEM, f32
    bout_ref,     # (1, 1)        SMEM, f32
    v_out_ref,    # (TB, Hp)      VMEM, f32
    a_out_ref,    # (TB, T)       VMEM, f32
):
    Hp = wq_ref.shape[1]

    # k|v projection over all timesteps: (TB, T, D) @ (D, 2Hp), f32 accumulation on the MXU.
    kv = lax.dot_general(
        x_ref[...], wkv_ref[...],
        (((2,), (0,)), ((), ())),
        preferred_element_type=jnp.float32,
    ) + bkv_ref[...]

    # q projection of the last timestep only: (TB, D) @ (D, Hp).
    q = jnp.dot(xlast_ref[...], wq_ref[...],
                preferred_element_type=jnp.float32) + bq_ref[...]       # (TB, Hp)

    k = kv[:, :, :Hp]                                                    # tile-aligned views
    v = kv[:, :, Hp:]

    # Additive attention score; b_in already folded into the k bias host-side.
    h = jnp.tanh(q[:, None, :] + k)                                      # (TB, T, Hp)
    e = jnp.sum(h * wout_ref[...], axis=-1) + bout_ref[0, 0]             # (TB, T)

    # Exact softmax over time (a is an externally returned output -> no approx reciprocal).
    e = e - jnp.max(e, axis=1, keepdims=True)
    p = jnp.exp(e)
    a = p / jnp.sum(p, axis=1, keepdims=True)
    a_out_ref[...] = a.astype(a_out_ref.dtype)

    # Attention-weighted sum of values on the VPU (avoids per-row M=1 MXU passes).
    v_out_ref[...] = jnp.sum(a[:, :, None] * v, axis=1).astype(v_out_ref.dtype)


def final_attention_qkv(x, params, *, block_b=None):
    """x: (B, T, D). params: dict of weights (Linear weights pre-transposed to (in,out)).
    Returns (v, a) with v: (B, H), a: (B, T)."""
    B, T, D = x.shape
    H = params["wq"].shape[1]
    Hp = _round_up(H, 128)                       # lane-align H so k/v slices are free views
    in_dtype = x.dtype
    in_item = jnp.dtype(in_dtype).itemsize

    def pad_h(w):                                # pad last dim H -> Hp with zeros
        return jnp.pad(w, ((0, 0),) * (w.ndim - 1) + ((0, Hp - H),))

    # Host-side weight prep: pad to Hp, fuse k|v, fold b_in into the k bias, cast to x.dtype
    # so the MXU runs in the input's native dtype (f32 accumulation kept in the kernel).
    wq = pad_h(params["wq"]).astype(in_dtype)                                     # (D, Hp)
    wkv = jnp.concatenate([pad_h(params["wk"]), pad_h(params["wv"])],
                          axis=1).astype(in_dtype)                                # (D, 2Hp)
    bq = pad_h(params["bq"].reshape(1, H)).astype(jnp.float32)                    # (1, Hp)
    bk = pad_h((params["bk"] + params["b_in"][0]).reshape(1, H))                  # b_in folded
    bv = pad_h(params["bv"].reshape(1, H))
    bkv = jnp.concatenate([bk, bv], axis=1).astype(jnp.float32)                   # (1, 2Hp)
    wout = pad_h(params["wout"].reshape(1, H)).astype(jnp.float32)                # (1, Hp)
    bout = params["bout"].reshape(1, 1).astype(jnp.float32)                       # (1, 1)

    x_last = x[:, -1, :]                                                          # (B, D)

    # --- true per-batch-row VMEM footprint (bytes) and resident weight footprint.
    per_row = (
        2 * T * D * in_item          # x double buffer
        + 2 * D * in_item            # x_last double buffer
        + T * 2 * Hp * 4             # fused k|v f32 accumulator
        + T * Hp * 4                 # tanh(h) intermediate
        + Hp * 4                     # q
        + 4 * T * 4                  # e / p / a / scratch rows
        + 2 * (Hp + T) * 4           # double-buffered outputs
    )
    weight_bytes = 2 * (3 * D * Hp) * in_item + 2 * (4 * Hp) * 4 + 4096

    phys_vmem, multi_tc = _tpu_vmem_bytes()

    if block_b is None:
        live_budget = int(0.45 * phys_vmem) - weight_bytes
        block_b = max(8, min(1024, live_budget // per_row))
        if multi_tc and B > 8:
            # Keep >= 2 batch tiles so the "parallel" grid axis spans both v7x TensorCores.
            block_b = min(block_b, _round_up((B + 1) // 2, 8))
    block_b = max(8, (int(block_b) // 8) * 8)
    block_b = min(block_b, _round_up(B, 8))

    # Pad batch to a multiple of the tile (padded zero rows give a uniform softmax, no NaNs;
    # they are sliced off below).
    B_pad = _round_up(B, block_b)
    if B_pad != B:
        x = jnp.pad(x, ((0, B_pad - B), (0, 0), (0, 0)))
        x_last = jnp.pad(x_last, ((0, B_pad - B), (0, 0)))
    n_blocks = B_pad // block_b

    vmem_est = weight_bytes + block_b * per_row
    vmem_limit = int(min(phys_vmem - 4 * 1024 * 1024,
                         max(32 * 1024 * 1024, int(1.4 * vmem_est))))

    cost = pl.CostEstimate(
        flops=int(2 * B_pad * T * D * 2 * Hp          # k|v matmul
                  + 2 * B_pad * D * Hp                # q matmul
                  + B_pad * T * (3 * Hp + 8)),        # elementwise / reductions
        transcendentals=int(B_pad * T * (Hp + 1)),    # tanh + exp
        bytes_accessed=int(B_pad * T * D * in_item + B_pad * D * in_item
                           + (3 * D * Hp + 4 * Hp) * in_item
                           + B_pad * (Hp + T) * 4),
    )

    vspec = lambda shape, imap: pl.BlockSpec(shape, imap, memory_space=pltpu.VMEM)

    out_v, out_a = pl.pallas_call(
        _final_attention_kernel,
        out_shape=(
            jax.ShapeDtypeStruct((B_pad, Hp), jnp.float32),
            jax.ShapeDtypeStruct((B_pad, T), jnp.float32),
        ),
        grid=(n_blocks,),
        in_specs=[
            vspec((block_b, T, D), lambda i: (i, 0, 0)),   # x: tiled over batch
            vspec((block_b, D), lambda i: (i, 0)),         # x[:, -1, :]
            vspec((D, Hp), lambda i: (0, 0)),              # W_q (grid-invariant, resident)
            vspec((D, 2 * Hp), lambda i: (0, 0)),          # fused W_k|W_v (resident)
            vspec((1, Hp), lambda i: (0, 0)),              # b_q
            vspec((1, 2 * Hp), lambda i: (0, 0)),          # b_k(+b_in) | b_v
            vspec((1, Hp), lambda i: (0, 0)),              # W_out row
            pl.BlockSpec((1, 1), lambda i: (0, 0), memory_space=pltpu.SMEM),   # b_out
        ],
        out_specs=(
            vspec((block_b, Hp), lambda i: (i, 0)),
            vspec((block_b, T), lambda i: (i, 0)),
        ),
        compiler_params=pltpu.CompilerParams(
            dimension_semantics=("parallel",),
            vmem_limit_bytes=vmem_limit,
        ),
        cost_estimate=cost,
    )(x, x_last, wq, wkv, bq, bkv, wout, bout)

    return out_v[:B, :H], out_a[:B]


def init_params(key, input_dim, hidden_dim):
    """Deterministic init mimicking the PyTorch module (kaiming_uniform a=sqrt(5))."""
    ks = jax.random.split(key, 8)

    def uniform_bound(k, fan_in, shape):
        bound = 1.0 / math.sqrt(fan_in)
        return jax.random.uniform(k, shape, jnp.float32, -bound, bound)

    # Linear weights stored transposed: (in_dim, out_dim).
    return {
        "wq": uniform_bound(ks[0], input_dim, (input_dim, hidden_dim)),
        "bq": uniform_bound(ks[1], input_dim, (hidden_dim,)),
        "wk": uniform_bound(ks[2], input_dim, (input_dim, hidden_dim)),
        "bk": uniform_bound(ks[3], input_dim, (hidden_dim,)),
        "wv": uniform_bound(ks[4], input_dim, (input_dim, hidden_dim)),
        "bv": uniform_bound(ks[5], input_dim, (hidden_dim,)),
        "wout": uniform_bound(ks[6], hidden_dim, (hidden_dim,)),   # W_out: Linear(H, 1)
        "bout": uniform_bound(ks[7], hidden_dim, (1,)),
        "b_in": jnp.zeros((1,), jnp.float32),
        # Wh / Wa / ba belong to the 'concat' branch and are unused for 'add'.
    }


def reference_forward(x, params):
    """Pure-JAX reference of the PyTorch 'add' attention forward."""
    q = x[:, -1, :] @ params["wq"] + params["bq"]
    k = jnp.einsum("btd,dh->bth", x, params["wk"]) + params["bk"]
    v = jnp.einsum("btd,dh->bth", x, params["wv"]) + params["bv"]
    h = jnp.tanh(q[:, None, :] + k + params["b_in"][0])
    e = jnp.einsum("bth,h->bt", h, params["wout"]) + params["bout"][0]
    a = jax.nn.softmax(e, axis=1)
    out = jnp.einsum("bt,bth->bh", a, v)
    return out, a


if __name__ == "__main__":
    key = jax.random.PRNGKey(0)

    # --- test 1: small shape, single tile (batch padding 2 -> 8, H padded 32 -> 128)
    B, T, D, H = 2, 8, 32, 32
    k_x, k_p, k_x2 = jax.random.split(key, 3)
    x = jax.random.normal(k_x, (B, T, D), jnp.float32)
    params = init_params(k_p, D, H)

    fn = jax.jit(final_attention_qkv)
    v_out, a_out = fn(x, params)
    jax.block_until_ready((v_out, a_out))

    v_ref, a_ref = reference_forward(x, params)
    assert v_out.shape == (B, H) and a_out.shape == (B, T)
    assert jnp.allclose(v_out, v_ref, atol=2e-3, rtol=2e-3)
    assert jnp.allclose(a_out, a_ref, atol=2e-3, rtol=2e-3)

    # --- test 2: multi-tile grid over batch (block_b=8, B=20 -> padded to 24, 3 tiles)
    B2, T2, D2, H2 = 20, 16, 48, 40
    x2 = jax.random.normal(k_x2, (B2, T2, D2), jnp.float32)
    params2 = init_params(jax.random.PRNGKey(1), D2, H2)

    fn2 = jax.jit(lambda xx, pp: final_attention_qkv(xx, pp, block_b=8))
    v2, a2 = fn2(x2, params2)
    jax.block_until_ready((v2, a2))

    v2_ref, a2_ref = reference_forward(x2, params2)
    assert v2.shape == (B2, H2) and a2.shape == (B2, T2)
    assert jnp.allclose(v2, v2_ref, atol=2e-3, rtol=2e-3)
    assert jnp.allclose(a2, a2_ref, atol=2e-3, rtol=2e-3)

    print("KERNEL_OK")
</pallas_src>

<mosaic_0001>
module attributes {stable_mosaic.version = 11 : i64} {
  func.func @_final_attention_kernel(%arg0: i32, %arg1: memref<8x8x32xf32, #tpu.memory_space<vmem>>, %arg2: memref<8x32xf32, #tpu.memory_space<vmem>>, %arg3: memref<32x128xf32, #tpu.memory_space<vmem>>, %arg4: memref<32x256xf32, #tpu.memory_space<vmem>>, %arg5: memref<1x128xf32, #tpu.memory_space<vmem>>, %arg6: memref<1x256xf32, #tpu.memory_space<vmem>>, %arg7: memref<1x128xf32, #tpu.memory_space<vmem>>, %arg8: memref<1x1xf32, #tpu.memory_space<smem>>, %arg9: memref<8x128xf32, #tpu.memory_space<vmem>>, %arg10: memref<8x8xf32, #tpu.memory_space<vmem>>) attributes {dimension_semantics = [#tpu.dimension_semantics<parallel>], iteration_bounds = array<i64: 1>, scalar_prefetch = 0 : i64, scratch_operands = 0 : i64, tpu.core_type = #tpu.core_type<tc>, window_params = [{transform_indices = @transform_0, window_bounds = array<i64: 8, 8, 32>}, {transform_indices = @transform_1, window_bounds = array<i64: 8, 32>}, {pipeline_mode = #tpu.pipeline_mode<synchronous>, transform_indices = @transform_2, window_bounds = array<i64: 32, 128>}, {pipeline_mode = #tpu.pipeline_mode<synchronous>, transform_indices = @transform_3, window_bounds = array<i64: 32, 256>}, {pipeline_mode = #tpu.pipeline_mode<synchronous>, transform_indices = @transform_4, window_bounds = array<i64: 1, 128>}, {pipeline_mode = #tpu.pipeline_mode<synchronous>, transform_indices = @transform_5, window_bounds = array<i64: 1, 256>}, {pipeline_mode = #tpu.pipeline_mode<synchronous>, transform_indices = @transform_6, window_bounds = array<i64: 1, 128>}, {transform_indices = @transform_7, window_bounds = array<i64: 1, 1>}, {transform_indices = @transform_8, window_bounds = array<i64: 8, 128>}, {transform_indices = @transform_9, window_bounds = array<i64: 8, 8>}]} {
    %c0 = arith.constant 0 : index
    %c0_0 = arith.constant 0 : index
    %c0_1 = arith.constant 0 : index
    %0 = vector.load %arg1[%c0, %c0_0, %c0_1] : memref<8x8x32xf32, #tpu.memory_space<vmem>>, vector<8x8x32xf32>
    %c0_2 = arith.constant 0 : index
    %c0_3 = arith.constant 0 : index
    %1 = vector.load %arg4[%c0_2, %c0_3] : memref<32x256xf32, #tpu.memory_space<vmem>>, vector<32x256xf32>
    %cst = arith.constant dense<0.000000e+00> : vector<8x8x256xf32>
    %2 = tpu.matmul %0, %1, %cst {dimension_numbers = #tpu.dot_dimension_numbers<[2], [0], [0, 1], [1], [0, 0, 0, 1, 1, 1], [], []>} : vector<8x8x32xf32>, vector<32x256xf32>, vector<8x8x256xf32> -> vector<8x8x256xf32>
    %c0_4 = arith.constant 0 : index
    %c0_5 = arith.constant 0 : index
    %3 = vector.load %arg6[%c0_4, %c0_5] : memref<1x256xf32, #tpu.memory_space<vmem>>, vector<1x256xf32>
    %4 = vector.shape_cast %3 : vector<1x256xf32> to vector<1x1x256xf32>
    %5 = vector.broadcast %4 : vector<1x1x256xf32> to vector<8x8x256xf32>
    %6 = arith.addf %2, %5 : vector<8x8x256xf32>
    %c0_6 = arith.constant 0 : index
    %c0_7 = arith.constant 0 : index
    %7 = vector.load %arg2[%c0_6, %c0_7] : memref<8x32xf32, #tpu.memory_space<vmem>>, vector<8x32xf32>
    %c0_8 = arith.constant 0 : index
    %c0_9 = arith.constant 0 : index
    %8 = vector.load %arg3[%c0_8, %c0_9] : memref<32x128xf32, #tpu.memory_space<vmem>>, vector<32x128xf32>
    %cst_10 = arith.constant dense<0.000000e+00> : vector<8x128xf32>
    %9 = tpu.matmul %7, %8, %cst_10 {dimension_numbers = #tpu.dot_dimension_numbers<[1], [0], [0], [1], [0, 0, 1, 1], [], []>} : vector<8x32xf32>, vector<32x128xf32>, vector<8x128xf32> -> vector<8x128xf32>
    %c0_11 = arith.constant 0 : index
    %c0_12 = arith.constant 0 : index
    %10 = vector.load %arg5[%c0_11, %c0_12] : memref<1x128xf32, #tpu.memory_space<vmem>>, vector<1x128xf32>
    %11 = vector.broadcast %10 : vector<1x128xf32> to vector<8x128xf32>
    %12 = arith.addf %9, %11 : vector<8x128xf32>
    %13 = vector.extract_strided_slice %6 {offsets = [0, 0, 0], sizes = [8, 8, 128], strides = [1, 1, 1]} : vector<8x8x256xf32> to vector<8x8x128xf32>
    %14 = vector.extract_strided_slice %6 {offsets = [0, 0, 128], sizes = [8, 8, 128], strides = [1, 1, 1]} : vector<8x8x256xf32> to vector<8x8x128xf32>
    %15 = vector.shape_cast %12 : vector<8x128xf32> to vector<8x1x128xf32>
    %16 = vector.broadcast %15 : vector<8x1x128xf32> to vector<8x8x128xf32>
    %17 = arith.addf %16, %13 : vector<8x8x128xf32>
    %18 = math.tanh %17 : vector<8x8x128xf32>
    %c0_13 = arith.constant 0 : index
    %c0_14 = arith.constant 0 : index
    %19 = vector.load %arg7[%c0_13, %c0_14] : memref<1x128xf32, #tpu.memory_space<vmem>>, vector<1x128xf32>
    %20 = vector.shape_cast %19 : vector<1x128xf32> to vector<1x1x128xf32>
    %21 = vector.broadcast %20 : vector<1x1x128xf32> to vector<8x8x128xf32>
    %22 = arith.mulf %18, %21 : vector<8x8x128xf32>
    %cst_15 = arith.constant dense<0.000000e+00> : vector<8x8xf32>
    %23 = vector.multi_reduction <add>, %22, %cst_15 [2] : vector<8x8x128xf32> to vector<8x8xf32>
    %c0_16 = arith.constant 0 : index
    %c0_17 = arith.constant 0 : index
    %24 = memref.load %arg8[%c0_16, %c0_17] : memref<1x1xf32, #tpu.memory_space<smem>>
    %25 = vector.broadcast %24 : f32 to vector<8x8xf32>
    %26 = arith.addf %23, %25 : vector<8x8xf32>
    %cst_18 = arith.constant dense<0xFF800000> : vector<8xf32>
    %27 = vector.multi_reduction <maximumf>, %26, %cst_18 [1] : vector<8x8xf32> to vector<8xf32>
    %28 = vector.shape_cast %27 : vector<8xf32> to vector<8x1xf32>
    %29 = vector.broadcast %28 : vector<8x1xf32> to vector<8x8xf32>
    %30 = arith.subf %26, %29 : vector<8x8xf32>
    %31 = math.exp %30 : vector<8x8xf32>
    %cst_19 = arith.constant dense<0.000000e+00> : vector<8xf32>
    %32 = vector.multi_reduction <add>, %31, %cst_19 [1] : vector<8x8xf32> to vector<8xf32>
    %33 = vector.shape_cast %32 : vector<8xf32> to vector<8x1xf32>
    %34 = vector.broadcast %33 : vector<8x1xf32> to vector<8x8xf32>
    %35 = arith.divf %31, %34 : vector<8x8xf32>
    %c0_20 = arith.constant 0 : index
    %c0_21 = arith.constant 0 : index
    %36 = vector.load %arg10[%c0_20, %c0_21] : memref<8x8xf32, #tpu.memory_space<vmem>>, vector<8x8xf32>
    tpu.vector_store %arg10[%c0_20, %c0_21], %35 {strides = array<i32>} : memref<8x8xf32, #tpu.memory_space<vmem>>, vector<8x8xf32>,
    %37 = vector.shape_cast %35 : vector<8x8xf32> to vector<8x8x1xf32>
    %38 = vector.broadcast %37 : vector<8x8x1xf32> to vector<8x8x128xf32>
    %39 = arith.mulf %38, %14 : vector<8x8x128xf32>
    %cst_22 = arith.constant dense<0.000000e+00> : vector<8x128xf32>
    %40 = vector.multi_reduction <add>, %39, %cst_22 [1] : vector<8x8x128xf32> to vector<8x128xf32>
    %c0_23 = arith.constant 0 : index
    %c0_24 = arith.constant 0 : index
    %41 = vector.load %arg9[%c0_23, %c0_24] : memref<8x128xf32, #tpu.memory_space<vmem>>, vector<8x128xf32>
    tpu.vector_store %arg9[%c0_23, %c0_24], %40 {strides = array<i32>} : memref<8x128xf32, #tpu.memory_space<vmem>>, vector<8x128xf32>,
    return
  }
  func.func @transform_0(%arg0: i32) -> (i32, i32, i32) {
    %c0_i32 = arith.constant 0 : i32
    %c0_i32_0 = arith.constant 0 : i32
    %c0_i32_1 = arith.constant 0 : i32
    return %arg0, %c0_i32, %c0_i32_0 : i32, i32, i32
  }
  func.func @transform_1(%arg0: i32) -> (i32, i32) {
    %c0_i32 = arith.constant 0 : i32
    %c0_i32_0 = arith.constant 0 : i32
    return %arg0, %c0_i32 : i32, i32
  }
  func.func @transform_2(%arg0: i32) -> (i32, i32) {
    %c0_i32 = arith.constant 0 : i32
    %c0_i32_0 = arith.constant 0 : i32
    %c0_i32_1 = arith.constant 0 : i32
    return %c0_i32, %c0_i32_0 : i32, i32
  }
  func.func @transform_3(%arg0: i32) -> (i32, i32) {
    %c0_i32 = arith.constant 0 : i32
    %c0_i32_0 = arith.constant 0 : i32
    %c0_i32_1 = arith.constant 0 : i32
    return %c0_i32, %c0_i32_0 : i32, i32
  }
  func.func @transform_4(%arg0: i32) -> (i32, i32) {
    %c0_i32 = arith.constant 0 : i32
    %c0_i32_0 = arith.constant 0 : i32
    %c0_i32_1 = arith.constant 0 : i32
    return %c0_i32, %c0_i32_0 : i32, i32
  }
  func.func @transform_5(%arg0: i32) -> (i32, i32) {
    %c0_i32 = arith.constant 0 : i32
    %c0_i32_0 = arith.constant 0 : i32
    %c0_i32_1 = arith.constant 0 : i32
    return %c0_i32, %c0_i32_0 : i32, i32
  }
  func.func @transform_6(%arg0: i32) -> (i32, i32) {
    %c0_i32 = arith.constant 0 : i32
    %c0_i32_0 = arith.constant 0 : i32
    %c0_i32_1 = arith.constant 0 : i32
    return %c0_i32, %c0_i32_0 : i32, i32
  }
  func.func @transform_7(%arg0: i32) -> (i32, i32) {
    %c0_i32 = arith.constant 0 : i32
    %c0_i32_0 = arith.constant 0 : i32
    %c0_i32_1 = arith.constant 0 : i32
    return %c0_i32, %c0_i32_0 : i32, i32
  }
  func.func @transform_8(%arg0: i32) -> (i32, i32) {
    %c0_i32 = arith.constant 0 : i32
    %c0_i32_0 = arith.constant 0 : i32
    return %arg0, %c0_i32 : i32, i32
  }
  func.func @transform_9(%arg0: i32) -> (i32, i32) {
    %c0_i32 = arith.constant 0 : i32
    %c0_i32_0 = arith.constant 0 : i32
    return %arg0, %c0_i32 : i32, i32
  }
}

</mosaic_0001>

<bundles_post_ra>
// kernel: final_attention_qkv.1
= control target key start
LH: loop header
LB: loop body
LE: loop exit
PB: predicated region body
PF: predicated region fallthrough
CT: control target
= control target key end

     0   :  { %v950_v3 = vmov 0.0   ;;  %vm60_vm0 = vcmask 261120   ;;  %v951_v18 = vmov 0.0|0.0   ;;  %vm952_vm1 = vmmov 0   ;;  %s1274_s3 = inlined_call_operand.vmem [shape: f32[32,256], index: 3, kind: input, shape index: {}]   ;;  %s1275_s2 = inlined_call_operand.vmem [shape: f32[32,128], index: 2, kind: input, shape index: {}]   ;;  %s1276_s0 = inlined_call_operand.vmem [shape: f32[8,8,32], index: 0, kind: input, shape index: {}]   ;;  %s1277_s1 = inlined_call_operand.vmem [shape: f32[8,32], index: 1, kind: input, shape index: {}]   ;;  %s1278_s4 = inlined_call_operand.vmem [shape: f32[1,128], index: 4, kind: input, shape index: {}]   ;;  %s1279_s5 = inlined_call_operand.vmem [shape: f32[1,256], index: 5, kind: input, shape index: {}]   ;;  %s1280_s6 = inlined_call_operand.vmem [shape: f32[1,128], index: 6, kind: input, shape index: {}]   ;;  %s1281_s7 = inlined_call_operand.<no memory space> [shape: f32[1,1], index: 7, kind: input, shape index: {}]   ;;  %s1282_s9 = inlined_call_operand.vmem [shape: f32[8,8], index: 9, kind: output, shape index: {1}]   ;;  %s1283_s8 = inlined_call_operand.vmem [shape: f32[8,128], index: 8, kind: output, shape index: {0}]  }
   0x1   :  { %v41_v0 = vld [vmem:[%s1274_s3 + $0x8] sm:$0xff]  ;;  %v43_v1 = vld [vmem:[%s1274_s3 + $0x18] sm:$0xff]  ;;  %v40_v2 = vld [vmem:[%s1274_s3] sm:$0xff]  ;;  %179 = vmatprep.mubr.f32.mxu1 %v950_v3  ;;  %149 = vmatprep.mubr.f32.mxu0 %v950_v3  ;;  %v50_v33 = vlaneseq  ;;  %v953_v34 = vmov 1966171168   ;;  %vm472_vm2 = vcmask 1041409  }
   0x2   :  { %v877_v4 = vpack.c.bf16 %v43_v1, %v41_v0  ;;  %v42_v5 = vld [vmem:[%s1274_s3 + $0x10] sm:$0xff]  ;;  %v45_v6 = vld [vmem:[%s1274_s3 + $0x28] sm:$0xff]  ;;  %v47_v7 = vld [vmem:[%s1274_s3 + $0x38] sm:$0xff]  ;;  %v286_v35 = vunpack.c.l.s4 %v953_v34  ;;  %vm474_vm3 = vcmask 1042434   ;;  %vm476_vm4 = vcmask 1043459  }
   0x3   :  { %v879_v8 = vpack.c.bf16 %v42_v5, %v40_v2  ;;  %v881_v9 = vpack.c.bf16 %v47_v7, %v45_v6  ;;  %v44_v10 = vld [vmem:[%s1274_s3 + $0x20] sm:$0xff]  ;;  %v46_v11 = vld [vmem:[%s1274_s3 + $0x30] sm:$0xff]  ;;  %v200_v14 = vld [vmem:[%s1275_s2 + $0x8] sm:$0xff]  ;;  %v1086_v40 = vshrl.u32 %v50_v33, 7  ;;  %vm478_vm5 = vcmask 1044484  }
   0x4   :  { %891 = vmatprep.subr.bf16.mxu1 %v877_v4  ;;  %878 = vmatprep.subr.bf16.mxu0 %v877_v4  ;;  %v883_v12 = vpack.c.bf16 %v46_v11, %v44_v10  ;;  %v199_v13 = vld [vmem:[%s1275_s2] sm:$0xff]  ;;  %v37_v15 = vld [vmem:[%s1276_s0 + $0x28] sm:$0xff]  ;;  %v201_v19 = vld [vmem:[%s1275_s2 + $0x10] sm:$0xff]  ;;  %v287_v41 = vunpack.c.0.s8 %v286_v35  ;;  %vm480_vm6 = vcmask 1045509   ;;  %vm482_vm7 = vcmask 1046534  }
   0x5   :  { %893 = vmatpush1.bf16.msra.mxu1 %v879_v8  ;;  %880 = vmatpush1.bf16.msra.mxu0 %v879_v8  ;;  %v886_v16 = vpack.c.bf16 %v200_v14, %v199_v13  ;;  %v32_v17 = vld [vmem:[%s1276_s0] sm:$0xff]  ;;  %v202_v20 = vld [vmem:[%s1275_s2 + $0x18] sm:$0xff]  ;;  %v38_v21 = vld [vmem:[%s1276_s0 + $0x30] sm:$0xff]  ;;  %v1093_v46 = vsub.s32 0, %v1086_v40  ;;  %vm484_vm8 = vcmask 1047559   ;;  %vm487_vm9 = vcmask 64512  }
   0x6   :  { %892 = vmatprep.subr.bf16.mxu1 %v881_v9  ;;  %882 = vmatprep.subr.bf16.mxu0 %v881_v9  ;;  %v889_v22 = vpack.c.bf16 %v202_v20, %v201_v19  ;;  %v33_v23 = vld [vmem:[%s1276_s0 + $0x8] sm:$0xff]  ;;  %v39_v24 = vld [vmem:[%s1276_s0 + $0x38] sm:$0xff]  ;;  %v34_v25 = vld [vmem:[%s1276_s0 + $0x10] sm:$0xff]  ;;  %v290_v49 = vsub.s32 %v287_v41, %v1086_v40 }
   0x7   :  { %v198_v26 = vld [vmem:[%s1277_s1] sm:$0xff]  ;;  %v35_v27 = vld [vmem:[%s1276_s0 + $0x18] sm:$0xff] }
   0x8   :  { %v36_v28 = vld [vmem:[%s1276_s0 + $0x20] sm:$0xff] }
   0x9   :  { %894 = vmatpush1.bf16.msra.mxu1 %v883_v12  ;;  %884 = vmatpush1.bf16.msra.mxu0 %v883_v12  ;;  %v858_v47 = vld [vmem:[%s1278_s4] ss:$0 sm:$0xff] }
   0xa   :  { %885 = vmatprep.subr.bf16.mxu1 %v951_v18  ;;  %v1101_v48 = vld [vmem:[%s1279_s5] sm:$0x3] }
   0xb   :  { %v53_v55 = vrot.slane %v1101_v48, %v1093_v46  ;;  %v860_v34 = vld [vmem:[%s1280_s6] ss:$0 sm:$0xff] }
   0xc   :  { %855 = vmatmul.mubr.msk.f32.vlgmr.msra.gmra.mrb[0].mxu1 %vm60_vm0, %v37_v15  ;;  %850 = vmatmul.mubr.msk.f32.vlgmr.msra.gmra.mrb[0].mxu0 %vm60_vm0, %v32_v17 }
   0xd   :  { %887 = vmatpush3.bf16.msra.mxu1 %v886_v16  ;;  %185 = vmatprep.mubr.f32.mxu1 %v950_v3 }
   0xe   :  { %888 = vmatprep.subr.bf16.mxu1 %v951_v18  ;;  %155 = vmatprep.mubr.f32.mxu0 %v950_v3 }
  0x10   :  { %856 = vmatmul.mubr.msk.f32.gmra.mrb[2].mxu1 %vm60_vm0, %v38_v21  ;;  %851 = vmatmul.mubr.msk.f32.gmra.mrb[2].mxu0 %vm60_vm0, %v33_v23 }
  0x11   :  { %191 = vmatprep.mubr.f32.mxu1 %v950_v3  ;;  %890 = vmatpush3.bf16.msra.mxu1 %v889_v22 }
  0x12   :  { %161 = vmatprep.mubr.f32.mxu0 %v950_v3 }
  0x14   :  { %857 = vmatmul.mubr.msk.f32.gmra.mrb[4].mxu1 %vm60_vm0, %v39_v24  ;;  %852 = vmatmul.mubr.msk.f32.gmra.mrb[4].mxu0 %vm60_vm0, %v34_v25 }
  0x15   :  { %874 = vmatprep.mubr.msk.f32.mxu1 %vm952_vm1, %v950_v3  ;;  %167 = vmatprep.mubr.f32.mxu0 %v950_v3 }
  0x18   :  { %875 = vmatmul.mubr.msk.f32.vlgmr.msra.gmra.mrb[6].mxu1 %vm60_vm0, %v198_v26  ;;  %853 = vmatmul.mubr.msk.f32.gmra.mrb[6].mxu0 %vm60_vm0, %v35_v27 }
  0x19   :  { %173 = vmatprep.mubr.f32.mxu0 %v950_v3 }
  0x1c   :  { %854 = vmatmul.mubr.msk.f32.gmra.mrb[8].mxu0 %vm60_vm0, %v36_v28 }
  0xdf   :  { %v181_v29 = vpop.f32.mrb[0].mxu1  ;;  %v151_v30 = vpop.f32.mrb[0].mxu0 }
  0xe0   :  { %v1077_v31 = vpop.f32.mrb[1].mxu1  ;;  %v1079_v32 = vpop.f32.mrb[1].mxu0  ;;  %v182_v63 = vadd.f32 %v181_v29, %v53_v55  ;;  %v152_v1 = vadd.f32 %v151_v30, %v53_v55 }
  0xe3   :  { %v187_v36 = vpop.f32.mrb[2].mxu1  ;;  %v157_v37 = vpop.f32.mrb[2].mxu0 }
  0xe4   :  { %v1081_v38 = vpop.f32.mrb[3].mxu1  ;;  %v1083_v39 = vpop.f32.mrb[3].mxu0  ;;  %v188_v0 = vadd.f32 %v187_v36, %v53_v55  ;;  %v158_v6 = vadd.f32 %v157_v37, %v53_v55 }
  0xe7   :  { %v193_v42 = vpop.f32.mrb[4].mxu1  ;;  %v163_v43 = vpop.f32.mrb[4].mxu0 }
  0xe8   :  { %v1088_v44 = vpop.f32.mrb[5].mxu1  ;;  %v1090_v45 = vpop.f32.mrb[5].mxu0  ;;  %v164_v7 = vadd.f32 %v163_v43, %v53_v55  ;;  %v194_v25 = vadd.f32 %v193_v42, %v53_v55 }
  0xeb   :  { %v279_v50 = vpop.f32.mrb[6].mxu1  ;;  %v169_v51 = vpop.f32.mrb[6].mxu0 }
  0xec   :  { %v280_v52 = vadd.f32 %v858_v47, %v279_v50  ;;  %v876_v53 = vpop.f32.mrb[7].mxu1  ;;  %v1104_v54 = vpop.f32.mrb[7].mxu0  ;;  %v170_v14 = vadd.f32 %v169_v51, %v53_v55 }
  0xee   :  { %v284_v56 = vcombine.high %v280_v52, %v280_v52  ;;  %v291_v57 = vrot.slane %v280_v52, %v290_v49 }
  0xef   :  { %v175_v58 = vpop.f32.mrb[8].mxu0 }
  0xf0   :  { %v298_v59 = vrot.slane %v284_v56, %v290_v49  ;;  %v299_v60 = vcombine.high %v291_v57, %v291_v57  ;;  %v307_v61 = vrot.slane %v291_v57, %v290_v49  ;;  %v1108_v62 = vpop.f32.mrb[9].mxu0  ;;  %v176_v8 = vadd.f32 %v175_v58, %v53_v55 }
  0xf2   :  { %v300_v2 = vcombine.high %v298_v59, %v298_v59  ;;  %v336_v3 = vrot.slane %v307_v61, %v1093_v46  ;;  %v321_v4 = vrot.slane %v299_v60, %v290_v49  ;;  %v329_v5 = vcombine.high %v307_v61, %v307_v61 }
  0xf3   :  { %v314_v9 = vrot.slane %v298_v59, %v290_v49  ;;  %v439_v59 = vand.u32 127, %v50_v33  ;;  %v421_v60 = vstv %s1281_s7 }
  0xf4   :  { %v328_v10 = vrot.slane %v300_v2, %v290_v49  ;;  %v373_v11 = vadd.f32 %v336_v3, %v152_v1  ;;  %v340_v12 = vrot.slane %v321_v4, %v1093_v46  ;;  %v344_v13 = vrot.slane %v329_v5, %v1093_v46 }
  0xf5   :  { %v331_v15 = vcombine.high %v321_v4, %v321_v4  ;;  %v330_v16 = vcombine.high %v314_v9, %v314_v9  ;;  %v352_v17 = vrot.slane %v314_v9, %v1093_v46 }
  0xf6   :  { %v332_v18 = vcombine.high %v328_v10, %v328_v10  ;;  %v356_v19 = vrot.slane %v328_v10, %v1093_v46  ;;  %902 = vtanh.f32 %v373_v11  ;;  %v374_v20 = vadd.f32 %v340_v12, %v158_v6 }
  0xf7   :  { %v375_v21 = vadd.f32 %v344_v13, %v164_v7  ;;  %v348_v22 = vrot.slane %v331_v15, %v1093_v46  ;;  %v360_v23 = vrot.slane %v330_v16, %v1093_v46  ;;  %v377_v24 = vadd.f32 %v352_v17, %v176_v8 }
  0xf8   :  { %v364_v26 = vrot.slane %v332_v18, %v1093_v46  ;;  %v378_v27 = vadd.f32 %v356_v19, %v182_v63  ;;  %904 = vtanh.f32 %v374_v20  ;;  %v1126_v63 = vsub.s32 %v439_v59, %v1086_v40 }
  0xf9   :  { %906 = vtanh.f32 %v375_v21  ;;  %v376_v28 = vadd.f32 %v348_v22, %v170_v14  ;;  %v379_v29 = vadd.f32 %v360_v23, %v188_v0 }
  0xfa   :  { %v380_v30 = vadd.f32 %v364_v26, %v194_v25 }
  0xfb   :  { %908 = vtanh.f32 %v376_v28 }
  0xfc   :  { %910 = vtanh.f32 %v377_v24 }
  0xfd   :  { %912 = vtanh.f32 %v378_v27 }
  0xfe   :  { %914 = vtanh.f32 %v379_v29 }
  0xff   :  { %916 = vtanh.f32 %v380_v30  ;;  %v954_v30 = vmov 0  }
 0x100   :  { %v903_v35 = vpop.eup %902  ;;  %901 = vset.pattern.permute.xlu0 %v954_v30  ;;  %900 = vset.pattern.permute.xlu1 %v954_v30 }
 0x101   :  { %v396_v36 = vmul.f32 %v903_v35, %v860_v34  ;;  %v1146_v35 = vsub.s32 1, %v1086_v40 }
 0x102   :  { %v905_v37 = vpop.eup %904 }
 0x103   :  { %v907_v41 = vpop.eup %906  ;;  %404 = vadd.xlane.f32.xlu0 %v396_v36  ;;  %v397_v47 = vmul.f32 %v905_v37, %v860_v34  ;;  %v506_v36 = vsub.s32 3, %v1086_v40 }
 0x104   :  { %v398_v42 = vmul.f32 %v907_v41, %v860_v34 }
 0x105   :  { %v909_v43 = vpop.eup %908 }
 0x106   :  { %v911_v49 = vpop.eup %910  ;;  %408 = vadd.xlane.f32.xlu1 %v398_v42  ;;  %v399_v50 = vmul.f32 %v909_v43, %v860_v34 }
 0x107   :  { %406 = vadd.xlane.f32.xlu0 %v397_v47  ;;  %v913_v51 = vpop.eup %912  ;;  %v400_v52 = vmul.f32 %v911_v49, %v860_v34  ;;  %v510_v47 = vsub.s32 4, %v1086_v40 }
 0x108   :  { %v915_v53 = vpop.eup %914  ;;  %v401_v55 = vmul.f32 %v913_v51, %v860_v34 }
 0x109   :  { %v917_v56 = vpop.eup %916  ;;  %v402_v57 = vmul.f32 %v915_v53, %v860_v34 }
 0x10a   :  { %410 = vadd.xlane.f32.xlu1 %v399_v50  ;;  %v403_v58 = vmul.f32 %v917_v56, %v860_v34  ;;  %v502_v34 = vsub.s32 2, %v1086_v40  ;;  %v514_v56 = vsub.s32 5, %v1086_v40 }
 0x10b   :  { %412 = vadd.xlane.f32.xlu0 %v400_v52 }
 0x10e   :  { %414 = vadd.xlane.f32.xlu1 %v401_v55 }
 0x10f   :  { %416 = vadd.xlane.f32.xlu0 %v402_v57 }
 0x112   :  { %418 = vadd.xlane.f32.xlu1 %v403_v58 }
 0x190   :  { %v405_v61 = vpop.xlane.xlu0 %404 }
 0x191   :  { %v422_v0 = vadd.f32 %v421_v60, %v405_v61 }
 0x193   :  { %v409_v1 = vpop.xlane.xlu1 %408  ;;  %v443_v5 = vrot.slane %v422_v0, %v1126_v63 }
 0x194   :  { %v424_v2 = vadd.f32 %v421_v60, %v409_v1  ;;  %v407_v3 = vpop.xlane.xlu0 %406 }
 0x195   :  { %v423_v4 = vadd.f32 %v421_v60, %v407_v3 }
 0x196   :  { %v451_v7 = vrot.slane %v424_v2, %v1126_v63 }
 0x197   :  { %v447_v6 = vrot.slane %v423_v4, %v1126_v63  ;;  %v411_v33 = vpop.xlane.xlu1 %410 }
 0x198   :  { %v425_v8 = vadd.f32 %v421_v60, %v411_v33  ;;  %v413_v9 = vpop.xlane.xlu0 %412 }
 0x199   :  { %v473_v10 = vsel %vm472_vm2, %v447_v6, %v443_v5  ;;  %v426_v11 = vadd.f32 %v421_v60, %v413_v9 }
 0x19a   :  { %v455_v12 = vrot.slane %v425_v8, %v1126_v63  ;;  %v475_v13 = vsel %vm474_vm3, %v451_v7, %v473_v10 }
 0x19b   :  { %v459_v14 = vrot.slane %v426_v11, %v1126_v63  ;;  %v415_v15 = vpop.xlane.xlu1 %414 }
 0x19c   :  { %v477_v16 = vsel %vm476_vm4, %v455_v12, %v475_v13  ;;  %v427_v17 = vadd.f32 %v421_v60, %v415_v15  ;;  %v417_v18 = vpop.xlane.xlu0 %416 }
 0x19d   :  { %v479_v19 = vsel %vm478_vm5, %v459_v14, %v477_v16  ;;  %v428_v20 = vadd.f32 %v421_v60, %v417_v18 }
 0x19e   :  { %v463_v21 = vrot.slane %v427_v17, %v1126_v63 }
 0x19f   :  { %v467_v22 = vrot.slane %v428_v20, %v1126_v63  ;;  %v419_v23 = vpop.xlane.xlu1 %418 }
 0x1a0   :  { %v429_v24 = vadd.f32 %v421_v60, %v419_v23  ;;  %v481_v25 = vsel %vm480_vm6, %v463_v21, %v479_v19  ;;  %v518_v60 = vsub.s32 6, %v1086_v40 }
 0x1a1   :  { %v483_v26 = vsel %vm482_vm7, %v467_v22, %v481_v25 }
 0x1a2   :  { %v471_v27 = vrot.slane %v429_v24, %v1126_v63 }
 0x1a4   :  { %v485_v28 = vsel %vm484_vm8, %v471_v27, %v483_v26 }
 0x1a5   :  { %v488_v29 = vsel %vm487_vm9, %v485_v28, -inf }
 0x1a6   :  { %489 = vmax.xlane.f32.xlu0 %v488_v29 }
 0x233   :  { %v490_v37 = vpop.xlane.xlu0 %489 }
 0x234   :  { %v495_v41 = vrot.slane %v490_v37, %v1093_v46  ;;  %v499_v42 = vrot.slane %v490_v37, %v1146_v35  ;;  %v503_v43 = vrot.slane %v490_v37, %v502_v34  ;;  %v507_v49 = vrot.slane %v490_v37, %v506_v36 }
 0x235   :  { %v511_v57 = vrot.slane %v490_v37, %v510_v47  ;;  %v515_v61 = vrot.slane %v490_v37, %v514_v56  ;;  %v519_v3 = vrot.slane %v490_v37, %v518_v60 }
 0x236   :  { %v532_v50 = vsub.f32 %v422_v0, %v495_v41  ;;  %v533_v51 = vsub.f32 %v423_v4, %v499_v42  ;;  %v534_v52 = vsub.f32 %v424_v2, %v503_v43  ;;  %v535_v58 = vsub.f32 %v425_v8, %v507_v49 }
 0x237   :  { %v536_v1 = vsub.f32 %v426_v11, %v511_v57  ;;  %v522_v2 = vsub.s32 7, %v1086_v40  ;;  %v537_v4 = vsub.f32 %v427_v17, %v515_v61  ;;  %v538_v8 = vsub.f32 %v428_v20, %v519_v3 }
 0x238   :  { %v540_v53 = vmul.f32 1.442695, %v532_v50  ;;  %v542_v55 = vmul.f32 1.442695, %v533_v51  ;;  %v544_v59 = vmul.f32 1.442695, %v534_v52 }
 0x239   :  { %v546_v0 = vmul.f32 1.442695, %v535_v58  ;;  %v548_v5 = vmul.f32 1.442695, %v536_v1  ;;  %v523_v7 = vrot.slane %v490_v37, %v522_v2  ;;  %v550_v9 = vmul.f32 1.442695, %v537_v4 }
 0x23a   :  { %918 = vpow2.f32 %v540_v53  ;;  %v552_v12 = vmul.f32 1.442695, %v538_v8 }
 0x23b   :  { %920 = vpow2.f32 %v542_v55  ;;  %v539_v11 = vsub.f32 %v429_v24, %v523_v7 }
 0x23c   :  { %922 = vpow2.f32 %v544_v59 }
 0x23d   :  { %924 = vpow2.f32 %v546_v0  ;;  %v554_v14 = vmul.f32 1.442695, %v539_v11 }
 0x23e   :  { %926 = vpow2.f32 %v548_v5 }
 0x23f   :  { %928 = vpow2.f32 %v550_v9 }
 0x240   :  { %930 = vpow2.f32 %v552_v12 }
 0x241   :  { %932 = vpow2.f32 %v554_v14 }
 0x244   :  { %v919_v6 = vpop.eup %918 }
 0x245   :  { %v1165_v33 = vpop.eup %920  ;;  %565 = vperm.xlu1 %900, %v919_v6  }
 0x246   :  { %568 = vperm.xlu0 %901, %v1165_v33   ;;  %v1170_v10 = vpop.eup %922 }
 0x247   :  { %v1173_v13 = vpop.eup %924 }
 0x248   :  { %v1176_v15 = vpop.eup %926 }
 0x249   :  { %571 = vperm.xlu1 %900, %v1170_v10   ;;  %v1179_v16 = vpop.eup %928 }
 0x24a   :  { %v1182_v17 = vpop.eup %930 }
 0x24b   :  { %v1185_v18 = vpop.eup %932 }
 0x24d   :  { %574 = vperm.xlu1 %900, %v1173_v13  }
 0x251   :  { %577 = vperm.xlu1 %900, %v1176_v15  }
 0x255   :  { %580 = vperm.xlu1 %900, %v1179_v16  }
 0x259   :  { %583 = vperm.xlu1 %900, %v1182_v17  }
 0x25d   :  { %586 = vperm.xlu1 %900, %v1185_v18  }
 0x2c4   :  { %v566_v19 = vpop.permute.xlu1 %565 }
 0x2c5   :  { %v569_v23 = vpop.permute.xlu0 %568  ;;  %v591_v26 = vrot.slane %v566_v19, %v1126_v63 }
 0x2c6   :  { %v595_v25 = vrot.slane %v569_v23, %v1126_v63 }
 0x2c8   :  { %v572_v20 = vpop.permute.xlu1 %571  ;;  %v620_v37 = vsel %vm472_vm2, %v595_v25, %v591_v26 }
 0x2c9   :  { %v599_v27 = vrot.slane %v572_v20, %v1126_v63 }
 0x2cb   :  { %v621_v42 = vsel %vm474_vm3, %v599_v27, %v620_v37 }
 0x2cc   :  { %v575_v21 = vpop.permute.xlu1 %574 }
 0x2cd   :  { %v603_v28 = vrot.slane %v575_v21, %v1126_v63 }
 0x2cf   :  { %v622_v49 = vsel %vm476_vm4, %v603_v28, %v621_v42 }
 0x2d0   :  { %v578_v22 = vpop.permute.xlu1 %577 }
 0x2d1   :  { %v607_v29 = vrot.slane %v578_v22, %v1126_v63 }
 0x2d3   :  { %v623_v50 = vsel %vm478_vm5, %v607_v29, %v622_v49 }
 0x2d4   :  { %v581_v24 = vpop.permute.xlu1 %580 }
 0x2d5   :  { %v611_v41 = vrot.slane %v581_v24, %v1126_v63 }
 0x2d7   :  { %v624_v52 = vsel %vm480_vm6, %v611_v41, %v623_v50 }
 0x2d8   :  { %v584_v30 = vpop.permute.xlu1 %583 }
 0x2d9   :  { %v615_v43 = vrot.slane %v584_v30, %v1126_v63 }
 0x2db   :  { %v625_v55 = vsel %vm482_vm7, %v615_v43, %v624_v52 }
 0x2dc   :  { %v587_v51 = vpop.permute.xlu1 %586 }
 0x2dd   :  { %v619_v53 = vrot.slane %v587_v51, %v1126_v63 }
 0x2df   :  { %v626_v57 = vsel %vm484_vm8, %v619_v53, %v625_v55 }
 0x2e0   :  { %v628_v58 = vsel %vm487_vm9, %v626_v57, 0.0 }
 0x2e1   :  { %629 = vadd.xlane.f32.xlu1 %v628_v58 }
 0x36e   :  { %v630_v59 = vpop.xlane.xlu1 %629 }
 0x36f   :  { %v635_v61 = vrot.slane %v630_v59, %v1093_v46  ;;  %v639_v1 = vrot.slane %v630_v59, %v1146_v35  ;;  %v643_v0 = vrot.slane %v630_v59, %v502_v34  ;;  %v647_v3 = vrot.slane %v630_v59, %v506_v36 }
 0x370   :  { %v651_v5 = vrot.slane %v630_v59, %v510_v47  ;;  %v655_v46 = vrot.slane %v630_v59, %v514_v56  ;;  %v659_v34 = vrot.slane %v630_v59, %v518_v60  ;;  %v663_v47 = vrot.slane %v630_v59, %v522_v2 }
 0x371   :  { %934 = vrcp.f32 %v635_v61  ;;  %v1227_v2 = vrot.slane %v1101_v48, %v1146_v35 }
 0x372   :  { %936 = vrcp.f32 %v639_v1 }
 0x373   :  { %938 = vrcp.f32 %v643_v0  ;;  %v172_v30 = vadd.f32 %v1104_v54, %v1227_v2  ;;  %v178_v49 = vadd.f32 %v1108_v62, %v1227_v2  ;;  %v184_v54 = vadd.f32 %v1077_v31, %v1227_v2 }
 0x374   :  { %940 = vrcp.f32 %v647_v3 }
 0x375   :  { %942 = vrcp.f32 %v651_v5 }
 0x376   :  { %944 = vrcp.f32 %v655_v46 }
 0x377   :  { %946 = vrcp.f32 %v659_v34 }
 0x378   :  { %948 = vrcp.f32 %v663_v47 }
 0x37b   :  { %v935_v4 = vpop.eup %934 }
 0x37c   :  { %v673_v7 = vmul.f32 %v935_v4, %v919_v6  ;;  %v937_v8 = vpop.eup %936 }
 0x37d   :  { %v675_v9 = vmul.f32 %v937_v8, %v1165_v33  ;;  %v939_v11 = vpop.eup %938 }
 0x37e   :  { %697 = vperm.xlu0 %901, %v673_v7   ;;  %v677_v36 = vmul.f32 %v939_v11, %v1170_v10  ;;  %v941_v12 = vpop.eup %940 }
 0x37f   :  { %v679_v6 = vmul.f32 %v941_v12, %v1173_v13  ;;  %v943_v14 = vpop.eup %942  ;;  %v154_v13 = vadd.f32 %v1079_v32, %v1227_v2 }
 0x380   :  { %v681_v56 = vmul.f32 %v943_v14, %v1176_v15  ;;  %v945_v33 = vpop.eup %944 }
 0x381   :  { %v683_v19 = vmul.f32 %v945_v33, %v1179_v16  ;;  %v947_v60 = vpop.eup %946  ;;  %v160_v16 = vadd.f32 %v1083_v39, %v1227_v2 }
 0x382   :  { %700 = vperm.xlu0 %901, %v675_v9   ;;  %v685_v10 = vmul.f32 %v947_v60, %v1182_v17  ;;  %v949_v20 = vpop.eup %948  ;;  %v190_v9 = vadd.f32 %v1081_v38, %v1227_v2 }
 0x383   :  { %v687_v40 = vmul.f32 %v949_v20, %v1185_v18  ;;  %v166_v18 = vadd.f32 %v1090_v45, %v1227_v2 }
 0x386   :  { %703 = vperm.xlu0 %901, %v677_v36  }
 0x38a   :  { %706 = vperm.xlu0 %901, %v679_v6  }
 0x38e   :  { %709 = vperm.xlu0 %901, %v681_v56  }
 0x392   :  { %712 = vperm.xlu0 %901, %v683_v19  }
 0x396   :  { %715 = vperm.xlu0 %901, %v685_v10  }
 0x39a   :  { %718 = vperm.xlu0 %901, %v687_v40  }
 0x3fd   :  { %v698_v15 = vpop.permute.xlu0 %697 }
 0x3fe   :  { %v769_v21 = vmul.f32 %v698_v15, %v154_v13  ;;  %v723_v11 = vrot.slane %v698_v15, %v1126_v63 }
 0x400   :  { %v777_v22 = vrot.slane %v769_v21, 4 }
 0x401   :  { %v701_v23 = vpop.permute.xlu0 %700 }
 0x402   :  { %v778_v17 = vadd.f32 %v777_v22, %v769_v21  ;;  %v770_v24 = vmul.f32 %v701_v23, %v160_v16  ;;  %v727_v3 = vrot.slane %v701_v23, %v1126_v63 }
 0x404   :  { %v779_v25 = vrot.slane %v778_v17, 2  ;;  %v783_v26 = vrot.slane %v770_v24, 4  ;;  %v752_v14 = vsel %vm472_vm2, %v727_v3, %v723_v11 }
 0x405   :  { %v704_v27 = vpop.permute.xlu0 %703 }
 0x406   :  { %v780_v48 = vadd.f32 %v779_v25, %v778_v17  ;;  %v784_v35 = vadd.f32 %v783_v26, %v770_v24  ;;  %v771_v28 = vmul.f32 %v704_v27, %v166_v18  ;;  %v731_v5 = vrot.slane %v704_v27, %v1126_v63 }
 0x407   :  { %v196_v17 = vadd.f32 %v1088_v44, %v1227_v2 }
 0x408   :  { %v785_v29 = vrot.slane %v784_v35, 2  ;;  %v789_v32 = vrot.slane %v771_v28, 4  ;;  %v781_v39 = vrot.slane %v780_v48, 1  ;;  %v753_v60 = vsel %vm474_vm3, %v731_v5, %v752_v14 }
 0x409   :  { %v707_v37 = vpop.permute.xlu0 %706 }
 0x40a   :  { %v786_v41 = vadd.f32 %v785_v29, %v784_v35  ;;  %v790_v42 = vadd.f32 %v789_v32, %v771_v28  ;;  %v772_v43 = vmul.f32 %v707_v37, %v172_v30  ;;  %v782_v53 = vadd.f32 %v781_v39, %v780_v48 }
 0x40b   :  { %v735_v31 = vrot.slane %v707_v37, %v1126_v63 }
 0x40c   :  { %v787_v45 = vrot.slane %v786_v41, 1  ;;  %v791_v50 = vrot.slane %v790_v42, 2  ;;  %v795_v51 = vrot.slane %v772_v43, 4 }
 0x40d   :  { %v710_v52 = vpop.permute.xlu0 %709  ;;  %v754_v40 = vsel %vm476_vm4, %v735_v31, %v753_v60 }
 0x40e   :  { %v788_v55 = vadd.f32 %v787_v45, %v786_v41  ;;  %v792_v57 = vadd.f32 %v791_v50, %v790_v42  ;;  %v773_v58 = vmul.f32 %v710_v52, %v178_v49  ;;  %v796_v59 = vadd.f32 %v795_v51, %v772_v43 }
 0x40f   :  { %v739_v12 = vrot.slane %v710_v52, %v1126_v63 }
 0x410   :  { %v833_v61 = vsel %vm472_vm2, %v788_v55, %v782_v53  ;;  %v793_v1 = vrot.slane %v792_v57, 1  ;;  %v801_v0 = vrot.slane %v773_v58, 4  ;;  %v797_v4 = vrot.slane %v796_v59, 2 }
 0x411   :  { %v713_v62 = vpop.permute.xlu0 %712  ;;  %v755_v21 = vsel %vm478_vm5, %v739_v12, %v754_v40 }
 0x412   :  { %v794_v7 = vadd.f32 %v793_v1, %v792_v57  ;;  %v802_v8 = vadd.f32 %v801_v0, %v773_v58  ;;  %v774_v46 = vmul.f32 %v713_v62, %v184_v54  ;;  %v798_v34 = vadd.f32 %v797_v4, %v796_v59 }
 0x413   :  { %v743_v33 = vrot.slane %v713_v62, %v1126_v63 }
 0x414   :  { %v834_v36 = vsel %vm474_vm3, %v794_v7, %v833_v61  ;;  %v803_v47 = vrot.slane %v802_v8, 2  ;;  %v807_v6 = vrot.slane %v774_v46, 4  ;;  %v799_v56 = vrot.slane %v798_v34, 1 }
 0x415   :  { %v716_v19 = vpop.permute.xlu0 %715  ;;  %v756_v18 = vsel %vm480_vm6, %v743_v33, %v755_v21 }
 0x416   :  { %v804_v38 = vadd.f32 %v803_v47, %v802_v8  ;;  %v808_v10 = vadd.f32 %v807_v6, %v774_v46  ;;  %v775_v20 = vmul.f32 %v716_v19, %v190_v9  ;;  %v800_v13 = vadd.f32 %v799_v56, %v798_v34 }
 0x417   :  { %v747_v15 = vrot.slane %v716_v19, %v1126_v63 }
 0x418   :  { %v805_v16 = vrot.slane %v804_v38, 1  ;;  %v809_v22 = vrot.slane %v808_v10, 2  ;;  %v813_v23 = vrot.slane %v775_v20, 4  ;;  %v835_v24 = vsel %vm476_vm4, %v800_v13, %v834_v36 }
 0x419   :  { %v719_v25 = vpop.permute.xlu0 %718  ;;  %v757_v28 = vsel %vm482_vm7, %v747_v15, %v756_v18 }
 0x41a   :  { %v806_v26 = vadd.f32 %v805_v16, %v804_v38  ;;  %v810_v27 = vadd.f32 %v809_v22, %v808_v10  ;;  %v814_v48 = vadd.f32 %v813_v23, %v775_v20  ;;  %v751_v35 = vrot.slane %v719_v25, %v1126_v63 }
 0x41b   :  { %v776_v29 = vmul.f32 %v719_v25, %v196_v17 }
 0x41c   :  { %v836_v32 = vsel %vm478_vm5, %v806_v26, %v835_v24  ;;  %v811_v30 = vrot.slane %v810_v27, 1  ;;  %v815_v37 = vrot.slane %v814_v48, 2  ;;  %v758_v39 = vsel %vm484_vm8, %v751_v35, %v757_v28 }
 0x41d   :  { %760 = vst.msk [vmem:[%s1282_s9] sm:$0xff] %vm487_vm9, %v758_v39  ;;  %v819_v44 = vrot.slane %v776_v29, 4 }
 0x41e   :  { %v812_v2 = vadd.f32 %v811_v30, %v810_v27  ;;  %v816_v41 = vadd.f32 %v815_v37, %v814_v48 }
 0x41f   :  { %v820_v42 = vadd.f32 %v819_v44, %v776_v29 }
 0x420   :  { %v837_v63 = vsel %vm480_vm6, %v812_v2, %v836_v32  ;;  %v817_v43 = vrot.slane %v816_v41, 1 }
 0x421   :  { %v821_v49 = vrot.slane %v820_v42, 2 }
 0x422   :  { %v818_v45 = vadd.f32 %v817_v43, %v816_v41 }
 0x423   :  { %v822_v50 = vadd.f32 %v821_v49, %v820_v42 }
 0x424   :  { %v838_v51 = vsel %vm482_vm7, %v818_v45, %v837_v63 }
 0x425   :  { %v823_v52 = vrot.slane %v822_v50, 1 }
 0x427   :  { %v824_v53 = vadd.f32 %v823_v52, %v822_v50 }
 0x429   :  { %v839_v55 = vsel %vm484_vm8, %v824_v53, %v838_v51 }
 0x42a   :  { %841 = vst [vmem:[%s1283_s8] sm:$0xff] %v839_v55 }

</bundles_post_ra>
